<compile_context>
chip_gen: v7x
topology: tpu7x:2x2x1
jax: 0.10.0
libtpu: 0.0.40
codegen_flags: <defaults>
</compile_context>

<pallas_src>
import math
import functools

import jax
import jax.numpy as jnp
from jax import lax
from jax.experimental import pallas as pl
from jax.experimental.pallas import tpu as pltpu

EPS = 1e-5                      # nn.LayerNorm default eps
_INV_SQRT2 = 1.0 / math.sqrt(2.0)


def _round_up(x, m):
    return ((x + m - 1) // m) * m


# --------------------------------------------------------------------------
# Tiled matmul (+ bias, + optional fused residual)
# --------------------------------------------------------------------------

def _matmul_kernel(*refs):
    if len(refs) == 6:
        a_ref, b_ref, bias_ref, res_ref, o_ref, acc_ref = refs
    else:
        a_ref, b_ref, bias_ref, o_ref, acc_ref = refs
        res_ref = None
    kk = pl.program_id(2)

    @pl.when(kk == 0)
    def _():
        acc_ref[...] = jnp.zeros_like(acc_ref)

    acc_ref[...] += jnp.dot(a_ref[...], b_ref[...],
                            preferred_element_type=jnp.float32)

    @pl.when(kk == pl.num_programs(2) - 1)
    def _():
        out = acc_ref[...] + bias_ref[...]
        if res_ref is not None:
            out = out + res_ref[...]
        o_ref[...] = out.astype(o_ref.dtype)


def pallas_matmul(a, b, bias=None, residual=None,
                  tm_cap=256, tn_cap=256, tk_cap=512):
    """(M,K) @ (K,N) + bias(N,) [+ residual(M,N)] -> (M,N) float32.
    bf16 MXU inputs, f32 accumulation, double-buffered tiles, megacore-shardable."""
    M, K = a.shape
    _, N = b.shape
    tm = min(tm_cap, _round_up(M, 8))
    tn = min(tn_cap, _round_up(N, 128))
    tk = min(tk_cap, _round_up(K, 128))
    Mp, Np, Kp = _round_up(M, tm), _round_up(N, tn), _round_up(K, tk)

    a_p = jnp.pad(a.astype(jnp.bfloat16), ((0, Mp - M), (0, Kp - K)))
    b_p = jnp.pad(b.astype(jnp.bfloat16), ((0, Kp - K), (0, Np - N)))
    if bias is None:
        bias_p = jnp.zeros((1, Np), jnp.float32)
    else:
        bias_p = jnp.pad(bias.astype(jnp.float32).reshape(1, N),
                         ((0, 0), (0, Np - N)))

    inputs = [a_p, b_p, bias_p]
    in_specs = [pl.BlockSpec((tm, tk), lambda i, j, k: (i, k)),
                pl.BlockSpec((tk, tn), lambda i, j, k: (k, j)),
                pl.BlockSpec((1, tn), lambda i, j, k: (0, j))]
    if residual is not None:
        res_p = jnp.pad(residual.astype(jnp.float32),
                        ((0, Mp - M), (0, Np - N)))
        inputs.append(res_p)
        in_specs.append(pl.BlockSpec((tm, tn), lambda i, j, k: (i, j)))

    out = pl.pallas_call(
        _matmul_kernel,
        out_shape=jax.ShapeDtypeStruct((Mp, Np), jnp.float32),
        grid=(Mp // tm, Np // tn, Kp // tk),
        in_specs=in_specs,
        out_specs=pl.BlockSpec((tm, tn), lambda i, j, k: (i, j)),
        scratch_shapes=[pltpu.VMEM((tm, tn), jnp.float32)],
        compiler_params=pltpu.CompilerParams(
            dimension_semantics=("parallel", "parallel", "arbitrary")),
    )(*inputs)
    return out[:M, :N]


# --------------------------------------------------------------------------
# LayerNorm over the channel (last) dim, tiled over rows
# --------------------------------------------------------------------------

def _layernorm_kernel(x_ref, g_ref, b_ref, o_ref):
    x = x_ref[...]
    mu = jnp.mean(x, axis=-1, keepdims=True)
    var = jnp.mean(jnp.square(x - mu), axis=-1, keepdims=True)
    inv = lax.rsqrt(var + EPS)
    o_ref[...] = (x - mu) * inv * g_ref[...] + b_ref[...]


def pallas_layernorm(x, gamma, beta, tm_cap=512):
    """LayerNorm over last dim of 2D x:(M,C)."""
    x = x.astype(jnp.float32)
    M, C = x.shape
    tm = min(tm_cap, _round_up(M, 8))
    Mp = _round_up(M, tm)
    xp = jnp.pad(x, ((0, Mp - M), (0, 0)))
    out = pl.pallas_call(
        _layernorm_kernel,
        out_shape=jax.ShapeDtypeStruct((Mp, C), jnp.float32),
        grid=(Mp // tm,),
        in_specs=[pl.BlockSpec((tm, C), lambda i: (i, 0)),
                  pl.BlockSpec((1, C), lambda i: (0, 0)),
                  pl.BlockSpec((1, C), lambda i: (0, 0))],
        out_specs=pl.BlockSpec((tm, C), lambda i: (i, 0)),
        compiler_params=pltpu.CompilerParams(dimension_semantics=("parallel",)),
    )(xp, gamma.reshape(1, C).astype(jnp.float32),
      beta.reshape(1, C).astype(jnp.float32))
    return out[:M]


# --------------------------------------------------------------------------
# Multi-head attention: one grid step per batch, heads packed on lanes
# --------------------------------------------------------------------------

def _attn_kernel(q_ref, k_ref, v_ref, o_ref, *, num_heads, scale):
    C = q_ref.shape[2]
    dh = C // num_heads
    q = q_ref[0]                      # (Lq, C) bf16, lane-dense
    k = k_ref[0]                      # (Lk, C)
    v = v_ref[0]                      # (Lk, C)
    outs = []
    for h in range(num_heads):        # static per-head lane slices in VMEM
        lo = h * dh
        s = lax.dot_general(q[:, lo:lo + dh], k[:, lo:lo + dh],
                            (((1,), (1,)), ((), ())),
                            preferred_element_type=jnp.float32) * scale
        s = s - jnp.max(s, axis=-1, keepdims=True)
        p = jnp.exp(s)
        p = p * pl.reciprocal(jnp.sum(p, axis=-1, keepdims=True), approx=True)
        outs.append(jnp.dot(p.astype(v.dtype), v[:, lo:lo + dh],
                            preferred_element_type=jnp.float32))
    o_ref[0] = jnp.concatenate(outs, axis=-1)   # single lane-dense (Lq, C) store


def pallas_attention(q, k, v, num_heads):
    """q:(B,Lq,C), k/v:(B,Lk,C) -> (B,Lq,C) f32; heads packed on channel axis."""
    B, Lq, C = q.shape
    Lk = k.shape[1]
    dh = C // num_heads
    scale = 1.0 / math.sqrt(dh)
    kern = functools.partial(_attn_kernel, num_heads=num_heads, scale=scale)
    # TODO(synk): tile over Lk flash-style (online softmax) for long sequences
    # instead of materializing the full (Lq, Lk) score matrix per head.
    return pl.pallas_call(
        kern,
        out_shape=jax.ShapeDtypeStruct((B, Lq, C), jnp.float32),
        grid=(B,),
        in_specs=[pl.BlockSpec((1, Lq, C), lambda i: (i, 0, 0)),
                  pl.BlockSpec((1, Lk, C), lambda i: (i, 0, 0)),
                  pl.BlockSpec((1, Lk, C), lambda i: (i, 0, 0))],
        out_specs=pl.BlockSpec((1, Lq, C), lambda i: (i, 0, 0)),
        compiler_params=pltpu.CompilerParams(dimension_semantics=("parallel",)),
    )(q.astype(jnp.bfloat16), k.astype(jnp.bfloat16), v.astype(jnp.bfloat16))


# --------------------------------------------------------------------------
# Depthwise 3x3 conv (groups=C, channel multiplier E) + bias + exact GELU
# --------------------------------------------------------------------------

def _dwconv_gelu_kernel(x_ref, w_ref, b_ref, o_ref, *, expansion):
    H, W = o_ref.shape[1], o_ref.shape[2]
    x = x_ref[0]                       # (H+2, W+2, C) bf16 (un-expanded input)
    w = w_ref[...]                     # (E, 3, 3, C) f32
    b = b_ref[...]                     # (E, C) f32
    outs = []
    for e in range(expansion):         # channel-multiplier expansion in VMEM
        acc = jnp.zeros((H, W, x.shape[-1]), jnp.float32)
        for dy in range(3):
            for dx in range(3):
                acc = acc + (x[dy:dy + H, dx:dx + W, :].astype(jnp.float32)
                             * w[e, dy, dx][None, None, :])
        acc = acc + b[e][None, None, :]
        # exact (erf-based) GELU, matching torch.nn.GELU() default
        acc = 0.5 * acc * (1.0 + lax.erf(acc * _INV_SQRT2))
        outs.append(acc)
    o_ref[0] = jnp.concatenate(outs, axis=-1)   # (H, W, E*C), e-major channels


def pallas_depthwise3x3_gelu(x, w_e, b_e, expansion):
    """x:(B,H,W,C), w_e:(E,3,3,C), b_e:(E,C). Output (B,H,W,E*C) with e-major
    channel order: out[..., e*C + c] == PyTorch output channel c*E + e."""
    B, H, W, C = x.shape
    xp = jnp.pad(x.astype(jnp.bfloat16), ((0, 0), (1, 1), (1, 1), (0, 0)))
    kern = functools.partial(_dwconv_gelu_kernel, expansion=expansion)
    # TODO(synk): tile over H with halo rows for production resolutions
    # (whole-image-per-batch blocks do not scale on v7x's 64 MiB VMEM).
    return pl.pallas_call(
        kern,
        out_shape=jax.ShapeDtypeStruct((B, H, W, C * expansion), jnp.float32),
        grid=(B,),
        in_specs=[pl.BlockSpec((1, H + 2, W + 2, C), lambda bb: (bb, 0, 0, 0)),
                  pl.BlockSpec((expansion, 3, 3, C), lambda bb: (0, 0, 0, 0)),
                  pl.BlockSpec((expansion, C), lambda bb: (0, 0))],
        out_specs=pl.BlockSpec((1, H, W, C * expansion),
                               lambda bb: (bb, 0, 0, 0)),
        compiler_params=pltpu.CompilerParams(dimension_semantics=("parallel",)),
    )(xp, w_e.astype(jnp.float32), b_e.astype(jnp.float32))


# --------------------------------------------------------------------------
# Module building blocks (JAX glue around the Pallas kernels)
# --------------------------------------------------------------------------

def conv2d_nhwc(x, w, bias, *, k, stride, pad):
    """Conv2d via im2col (glue, bf16) + tiled Pallas matmul.
    x:(B,H,W,Cin), w:(k,k,Cin,Cout), bias:(Cout,) or None."""
    B, H, W, Cin = x.shape
    Cout = w.shape[-1]
    Ho = (H + 2 * pad - k) // stride + 1
    Wo = (W + 2 * pad - k) // stride + 1
    xp = jnp.pad(x.astype(jnp.bfloat16),
                 ((0, 0), (pad, pad), (pad, pad), (0, 0)))
    # TODO(synk): replace im2col materialization with in-kernel tap accumulation
    # (strided reads) to avoid the k^2-duplicated HBM copy at large resolutions.
    cols = []
    for dy in range(k):
        for dx in range(k):
            cols.append(xp[:, dy: dy + (Ho - 1) * stride + 1: stride,
                           dx: dx + (Wo - 1) * stride + 1: stride, :])
    patches = jnp.concatenate(cols, axis=-1).reshape(B * Ho * Wo, k * k * Cin)
    y = pallas_matmul(patches, w.reshape(k * k * Cin, Cout), bias)
    return y.reshape(B, Ho, Wo, Cout)


def layernorm2d(x, gamma, beta):
    """LayerNorm2d: layernorm over channel dim (NHWC -> norm over last axis)."""
    B, H, W, C = x.shape
    y = pallas_layernorm(x.reshape(B * H * W, C), gamma, beta)
    return y.reshape(B, H, W, C)


def efficient_mha(x, p, residual, *, reduction_ratio, num_heads):
    B, H, W, C = x.shape
    r = reduction_ratio
    # reducer: Conv2d(C,C,kernel=r,stride=r) + LayerNorm2d
    red = conv2d_nhwc(x, p["red_w"], p["red_b"], k=r, stride=r, pad=0)
    Hr, Wr = red.shape[1], red.shape[2]
    red = layernorm2d(red, p["red_g"], p["red_beta"])
    Lq, Lk = H * W, Hr * Wr
    xq = x.reshape(B * Lq, C)
    xkv = red.reshape(B * Lk, C)
    # Fused K/V projection: lane-dense 2C output, one kernel launch.
    wkv = jnp.concatenate([p["wk"], p["wv"]], axis=1)
    bkv = jnp.concatenate([p["bk"], p["bv"]])
    q = pallas_matmul(xq, p["wq"], p["bq"]).reshape(B, Lq, C)
    kv = pallas_matmul(xkv, wkv, bkv)
    k = kv[:, :C].reshape(B, Lk, C)
    v = kv[:, C:].reshape(B, Lk, C)
    o = pallas_attention(q, k, v, num_heads)
    # Output projection with the residual add fused into the matmul epilogue.
    o = pallas_matmul(o.reshape(B * Lq, C), p["wo"], p["bo"],
                      residual=residual.reshape(B * Lq, C))
    return o.reshape(B, H, W, C)


def mix_mlp(x, p, residual, *, expansion):
    B, H, W, C = x.shape
    E = expansion
    h = pallas_matmul(x.reshape(B * H * W, C), p["w1"], p["b1"])
    h = h.reshape(B, H, W, C)
    # Reorder PyTorch-layout depthwise weights (out channel o = c*E + e) to the
    # kernel's e-major layout; weight-only glue, no activation traffic.
    w_e = p["dw_w"].reshape(3, 3, C, E).transpose(3, 0, 1, 2)     # (E,3,3,C)
    b_e = p["dw_b"].reshape(C, E).T                               # (E,C)
    h = pallas_depthwise3x3_gelu(h, w_e, b_e, E)                  # (B,H,W,E*C)
    # Permute w2 rows to match the e-major channel order of the kernel output,
    # and fuse the residual add into the matmul epilogue.
    w2_e = p["w2"].reshape(C, E, C).transpose(1, 0, 2).reshape(E * C, C)
    out = pallas_matmul(h.reshape(B * H * W, E * C), w2_e, p["b2"],
                        residual=residual.reshape(B * H * W, C))
    return out.reshape(B, H, W, C)


def encoder_block(x, p, *, reduction_ratio, num_heads, expansion):
    y = layernorm2d(x, p["ln1_g"], p["ln1_b"])
    x = efficient_mha(y, p["attn"], residual=x,
                      reduction_ratio=reduction_ratio, num_heads=num_heads)
    y = layernorm2d(x, p["ln2_g"], p["ln2_b"])
    # StochasticDepth(p=0.0, mode='batch') is the identity (drop_prob=0 / eval).
    # TODO(synk): training-mode stochastic depth (random batch drop) not modeled.
    x = mix_mlp(y, p["mlp"], residual=x, expansion=expansion)
    return x


def encoder_stage(x, p, sc):
    # OverlapPatchMerging: Conv2d(..., bias=False) + LayerNorm2d
    x = conv2d_nhwc(x, p["patch_w"], None, k=sc["patch_size"],
                    stride=sc["overlap_size"], pad=sc["patch_size"] // 2)
    x = layernorm2d(x, p["patch_g"], p["patch_b"])
    for bp in p["blocks"]:
        x = encoder_block(x, bp, reduction_ratio=sc["reduction_ratio"],
                          num_heads=sc["num_heads"],
                          expansion=sc["mlp_expansion"])
    x = layernorm2d(x, p["norm_g"], p["norm_b"])
    return x


def ptychoformer_encoder(x_nchw, params, cfg):
    """Input NCHW (PyTorch convention); returns list of NCHW features."""
    x = jnp.transpose(x_nchw, (0, 2, 3, 1))        # NCHW -> NHWC
    features = []
    for p, sc in zip(params, cfg):
        x = encoder_stage(x, p, sc)
        features.append(jnp.transpose(x, (0, 3, 1, 2)))  # NHWC -> NCHW
    return features


# --------------------------------------------------------------------------
# Deterministic parameter init (synthetic; no checkpoint loading)
# --------------------------------------------------------------------------

def init_params(seed, in_channels, widths, depths, all_num_heads, patch_sizes,
                overlap_sizes, reduction_ratios, mlp_expansions):
    keys = iter(jax.random.split(jax.random.PRNGKey(seed), 4096))

    def nrm(shape, scale=0.05):
        return scale * jax.random.normal(next(keys), shape, jnp.float32)

    params, cfg = [], []
    cins = [in_channels] + list(widths[:-1])
    for cin, cout, ps, ov, depth, r, nh, ex in zip(
            cins, widths, patch_sizes, overlap_sizes, depths,
            reduction_ratios, all_num_heads, mlp_expansions):
        stage = {
            "patch_w": nrm((ps, ps, cin, cout)),
            "patch_g": jnp.ones((cout,), jnp.float32),
            "patch_b": jnp.zeros((cout,), jnp.float32),
            "norm_g": jnp.ones((cout,), jnp.float32),
            "norm_b": jnp.zeros((cout,), jnp.float32),
            "blocks": [],
        }
        for _ in range(depth):
            blk = {
                "ln1_g": jnp.ones((cout,), jnp.float32),
                "ln1_b": jnp.zeros((cout,), jnp.float32),
                "ln2_g": jnp.ones((cout,), jnp.float32),
                "ln2_b": jnp.zeros((cout,), jnp.float32),
                "attn": {
                    "red_w": nrm((r, r, cout, cout)),
                    "red_b": nrm((cout,)),
                    "red_g": jnp.ones((cout,), jnp.float32),
                    "red_beta": jnp.zeros((cout,), jnp.float32),
                    "wq": nrm((cout, cout)), "bq": nrm((cout,)),
                    "wk": nrm((cout, cout)), "bk": nrm((cout,)),
                    "wv": nrm((cout, cout)), "bv": nrm((cout,)),
                    "wo": nrm((cout, cout)), "bo": nrm((cout,)),
                },
                "mlp": {
                    "w1": nrm((cout, cout)), "b1": nrm((cout,)),
                    "dw_w": nrm((3, 3, cout * ex)), "dw_b": nrm((cout * ex,)),
                    "w2": nrm((cout * ex, cout)), "b2": nrm((cout,)),
                },
            }
            stage["blocks"].append(blk)
        params.append(stage)
        cfg.append(dict(patch_size=ps, overlap_size=ov, reduction_ratio=r,
                        num_heads=nh, mlp_expansion=ex))
    return params, cfg


# --------------------------------------------------------------------------

if __name__ == "__main__":
    in_channels = 4
    widths = [16, 32]
    depths = [1, 1]
    all_num_heads = [2, 4]
    patch_sizes = [7, 3]
    overlap_sizes = [4, 2]
    reduction_ratios = [2, 1]
    mlp_expansions = [4, 4]
    # drop_prob = 0.0 -> StochasticDepth is identity (matches default config)

    params, cfg = init_params(0, in_channels, widths, depths, all_num_heads,
                              patch_sizes, overlap_sizes, reduction_ratios,
                              mlp_expansions)

    x = jax.random.normal(jax.random.PRNGKey(0), (2, in_channels, 16, 16),
                          jnp.float32)  # NCHW, PyTorch convention

    feats = ptychoformer_encoder(x, params, cfg)
    feats = [jax.block_until_ready(f) for f in feats]

    assert feats[0].shape == (2, 16, 4, 4), feats[0].shape
    assert feats[1].shape == (2, 32, 2, 2), feats[1].shape
    assert all(bool(jnp.isfinite(f).all()) for f in feats)
    print("KERNEL_OK")
</pallas_src>

<mosaic_0001>
module attributes {stable_mosaic.version = 11 : i64} {
  func.func @_matmul_kernel(%arg0: i32, %arg1: i32, %arg2: i32, %arg3: memref<32x256xbf16, #tpu.memory_space<vmem>>, %arg4: memref<256x128xbf16, #tpu.memory_space<vmem>>, %arg5: memref<1x128xf32, #tpu.memory_space<vmem>>, %arg6: memref<32x128xf32, #tpu.memory_space<vmem>>, %arg7: memref<32x128xf32, #tpu.memory_space<vmem>>) attributes {dimension_semantics = [#tpu.dimension_semantics<parallel>, #tpu.dimension_semantics<parallel>, #tpu.dimension_semantics<arbitrary>], iteration_bounds = array<i64: 1, 1, 1>, scalar_prefetch = 0 : i64, scratch_operands = 1 : i64, tpu.core_type = #tpu.core_type<tc>, window_params = [{transform_indices = @transform_0, window_bounds = array<i64: 32, 256>}, {transform_indices = @transform_1, window_bounds = array<i64: 256, 128>}, {transform_indices = @transform_2, window_bounds = array<i64: 1, 128>}, {transform_indices = @transform_3, window_bounds = array<i64: 32, 128>}]} {
    %c0_i32 = arith.constant 0 : i32
    %0 = arith.cmpi eq, %arg2, %c0_i32 : i32
    %1 = arith.extui %0 : i1 to i32
    %c0_i32_0 = arith.constant 0 : i32
    %2 = arith.cmpi ne, %1, %c0_i32_0 : i32
    scf.if %2 {
      %cst_10 = arith.constant 0.000000e+00 : f32
      %12 = vector.broadcast %cst_10 : f32 to vector<32x128xf32>
      %c0_11 = arith.constant 0 : index
      %c0_12 = arith.constant 0 : index
      %13 = vector.load %arg7[%c0_11, %c0_12] : memref<32x128xf32, #tpu.memory_space<vmem>>, vector<32x128xf32>
      tpu.vector_store %arg7[%c0_11, %c0_12], %12 {strides = array<i32>} : memref<32x128xf32, #tpu.memory_space<vmem>>, vector<32x128xf32>,
    } else {
    }
    %c0 = arith.constant 0 : index
    %c0_1 = arith.constant 0 : index
    %3 = vector.load %arg7[%c0, %c0_1] : memref<32x128xf32, #tpu.memory_space<vmem>>, vector<32x128xf32>
    %c0_2 = arith.constant 0 : index
    %c0_3 = arith.constant 0 : index
    %4 = vector.load %arg3[%c0_2, %c0_3] : memref<32x256xbf16, #tpu.memory_space<vmem>>, vector<32x256xbf16>
    %c0_4 = arith.constant 0 : index
    %c0_5 = arith.constant 0 : index
    %5 = vector.load %arg4[%c0_4, %c0_5] : memref<256x128xbf16, #tpu.memory_space<vmem>>, vector<256x128xbf16>
    %cst = arith.constant dense<0.000000e+00> : vector<32x128xf32>
    %6 = tpu.matmul %4, %5, %cst {dimension_numbers = #tpu.dot_dimension_numbers<[1], [0], [0], [1], [0, 0, 1, 1], [], []>} : vector<32x256xbf16>, vector<256x128xbf16>, vector<32x128xf32> -> vector<32x128xf32>
    %7 = arith.addf %3, %6 : vector<32x128xf32>
    %c0_6 = arith.constant 0 : index
    %c0_7 = arith.constant 0 : index
    %8 = vector.load %arg7[%c0_6, %c0_7] : memref<32x128xf32, #tpu.memory_space<vmem>>, vector<32x128xf32>
    tpu.vector_store %arg7[%c0_6, %c0_7], %7 {strides = array<i32>} : memref<32x128xf32, #tpu.memory_space<vmem>>, vector<32x128xf32>,
    %c0_i32_8 = arith.constant 0 : i32
    %9 = arith.cmpi eq, %arg2, %c0_i32_8 : i32
    %10 = arith.extui %9 : i1 to i32
    %c0_i32_9 = arith.constant 0 : i32
    %11 = arith.cmpi ne, %10, %c0_i32_9 : i32
    scf.if %11 {
      %c0_10 = arith.constant 0 : index
      %c0_11 = arith.constant 0 : index
      %12 = vector.load %arg7[%c0_10, %c0_11] : memref<32x128xf32, #tpu.memory_space<vmem>>, vector<32x128xf32>
      %c0_12 = arith.constant 0 : index
      %c0_13 = arith.constant 0 : index
      %13 = vector.load %arg5[%c0_12, %c0_13] : memref<1x128xf32, #tpu.memory_space<vmem>>, vector<1x128xf32>
      %14 = vector.broadcast %13 : vector<1x128xf32> to vector<32x128xf32>
      %15 = arith.addf %12, %14 : vector<32x128xf32>
      %c0_14 = arith.constant 0 : index
      %c0_15 = arith.constant 0 : index
      %16 = vector.load %arg6[%c0_14, %c0_15] : memref<32x128xf32, #tpu.memory_space<vmem>>, vector<32x128xf32>
      tpu.vector_store %arg6[%c0_14, %c0_15], %15 {strides = array<i32>} : memref<32x128xf32, #tpu.memory_space<vmem>>, vector<32x128xf32>,
    } else {
    }
    return
  }
  func.func @transform_0(%arg0: i32, %arg1: i32, %arg2: i32) -> (i32, i32) {
    %c0_i32 = arith.constant 0 : i32
    return %arg0, %arg2 : i32, i32
  }
  func.func @transform_1(%arg0: i32, %arg1: i32, %arg2: i32) -> (i32, i32) {
    %c0_i32 = arith.constant 0 : i32
    return %arg2, %arg1 : i32, i32
  }
  func.func @transform_2(%arg0: i32, %arg1: i32, %arg2: i32) -> (i32, i32) {
    %c0_i32 = arith.constant 0 : i32
    %c0_i32_0 = arith.constant 0 : i32
    return %c0_i32, %arg1 : i32, i32
  }
  func.func @transform_3(%arg0: i32, %arg1: i32, %arg2: i32) -> (i32, i32) {
    %c0_i32 = arith.constant 0 : i32
    return %arg0, %arg1 : i32, i32
  }
}

</mosaic_0001>

<bundles_post_ra>
// kernel: tpu_custom_call.1
= control target key start
LH: loop header
LB: loop body
LE: loop exit
PB: predicated region body
PF: predicated region fallthrough
CT: control target
= control target key end

     0   :  { %8 = vsyncpa [#allocation4], 0  ;;  %s543_s0 = inlined_call_operand.hbm [shape: bf16[32,256], index: 0, kind: input, shape index: {}]   ;;  %s544_s1 = inlined_call_operand.hbm [shape: bf16[256,128], index: 1, kind: input, shape index: {}]   ;;  %s545_s2 = inlined_call_operand.vmem [shape: f32[1,128], index: 2, kind: input, shape index: {}]   ;;  %s546_s3 = inlined_call_operand.hbm [shape: f32[32,128], index: 3, kind: output, shape index: {}]  }
   0x1   :  { %9 = vsyncpa [#allocation7], 0 }
   0x2   :  { %10 = vsyncpa [#allocation5], 0  ;;  %s471_s12 = smov [#allocation3]   ;;  %s399_s16 = scalar_lea.hbm %s543_s0, 512 }
   0x3   :  { %s16_s13 = sshll.u32 %s471_s12, 4  ;;  %p400_p0 = scmp.ne.s32.totalorder %s543_s0, %s399_s16  ;;  %s17_s13 = int_to_ptr.vmem [resolvable:$true] %s16_s13 }
   0x4   :  { %p403_p1 = scmp.lt.u32.totalorder %s399_s16, %s543_s0 }
   0x6   :  { %p405_p2 = pnand %p403_p1, %p400_p0 }
   0x8   :  { %408 = shalt.err (!%p405_p2)
}
   0x9   :  { %s409_s21 = scalar_lea.vmem %s17_s13, 512  ;;  %p414_p4 = scmp.lt.s32.totalorder %s17_s13, %s17_s13 }
   0xa   :  { %p410_p3 = scmp.ne.s32.totalorder %s17_s13, %s409_s21  ;;  %p415_p5 = scmp.lt.s32.totalorder %s409_s21, %s409_s21 }
   0xc   :  { %p416_p6 = por %p415_p5, %p414_p4 }
   0xe   :  { %p417_p7 = pnand %p416_p6, %p410_p3 }
  0x10   :  { %420 = shalt.err (!%p417_p7)
}
  0x11   :  { %s472_s22 = smov 128   ;;  %s473_s23 = smov 8  }
  0x12   :  { %22 = dma.hbm_to_vmem [thread:$0]  %s543_s0, 512, %s17_s13, [#allocation4], %s472_s22, %s472_s22, %s473_s23  }
  0x13   :  { %s474_s26 = smov [#allocation6]   ;;  %s421_s30 = scalar_lea.hbm %s544_s1, 2048 }
  0x14   :  { %s28_s27 = sshll.u32 %s474_s26, 4  ;;  %p422_p8 = scmp.ne.s32.totalorder %s544_s1, %s421_s30  ;;  %s29_s27 = int_to_ptr.vmem [resolvable:$true] %s28_s27 }
  0x15   :  { %p425_p9 = scmp.lt.u32.totalorder %s421_s30, %s544_s1 }
  0x17   :  { %p427_p10 = pnand %p425_p9, %p422_p8 }
  0x19   :  { %430 = shalt.err (!%p427_p10)
}
  0x1a   :  { %s431_s8 = scalar_lea.vmem %s29_s27, 2048  ;;  %p436_p12 = scmp.lt.s32.totalorder %s29_s27, %s29_s27 }
  0x1b   :  { %p432_p11 = scmp.ne.s32.totalorder %s29_s27, %s431_s8  ;;  %p437_p13 = scmp.lt.s32.totalorder %s431_s8, %s431_s8 }
  0x1d   :  { %p438_p0 = por %p437_p13, %p436_p12 }
  0x1f   :  { %p439_p1 = pnand %p438_p0, %p432_p11 }
  0x21   :  { %442 = shalt.err (!%p439_p1)
}
  0x22   :  { %s475_s0 = smov 64   ;;  %s476_s9 = smov 4  }
  0x23   :  { %34 = dma.hbm_to_vmem [thread:$0]  %s544_s1, 2048, %s29_s27, [#allocation7], %s475_s0, %s475_s0, %s476_s9  }
  0x24   :  { %465 = dma.done.wait [#allocation4], 512  }
  0x25   :  { %466 = vsyncadd [#allocation4], 4294966784 }
  0x26   :  { %467 = dma.done.wait [#allocation7], 2048  }
  0x27   :  { %468 = vsyncadd [#allocation7], 4294965248  ;;  %v377_v0 = vld [vmem:[#allocation6 + $0x40] sm:$0xff]   ;;  %v379_v2 = vld [vmem:[#allocation6 + $0x48] sm:$0xff]   ;;  %s477_s13 = smov [#allocation8]  }
  0x28   :  { %v378_v1 = vld [vmem:[#allocation6] sm:$0xff]   ;;  %326 = vmatprep.subr.bf16.mxu0 %v377_v0  ;;  %354 = vmatprep.subr.bf16.mxu1 %v377_v0  ;;  %v380_v3 = vld [vmem:[#allocation6 + $0x8] sm:$0xff]   ;;  %v381_v4 = vld [vmem:[#allocation6 + $0x50] sm:$0xff]   ;;  %s292_s14 = sshll.u32 %s477_s13, 4  ;;  %s293_s14 = int_to_ptr.vmem [resolvable:$true] %s292_s14 }
  0x29   :  { %327 = vmatpush3.bf16.msra.mxu0 %v378_v1  ;;  %362 = vmatpush3.bf16.msra.mxu1 %v378_v1  ;;  %v382_v5 = vld [vmem:[#allocation6 + $0x10] sm:$0xff]   ;;  %v383_v6 = vld [vmem:[#allocation6 + $0x58] sm:$0xff]   ;;  %v385_v8 = vld [vmem:[#allocation6 + $0x60] sm:$0xff]   ;;  %p448_p3 = scmp.lt.s32.totalorder %s293_s14, %s293_s14 }
  0x2a   :  { %328 = vmatprep.subr.bf16.mxu0 %v379_v2  ;;  %355 = vmatprep.subr.bf16.mxu1 %v379_v2  ;;  %v384_v7 = vld [vmem:[#allocation6 + $0x18] sm:$0xff]   ;;  %v386_v9 = vld [vmem:[#allocation6 + $0x20] sm:$0xff]   ;;  %v387_v10 = vld [vmem:[#allocation6 + $0x68] sm:$0xff]  }
  0x2b   :  { %v395_v11 = vld [vmem:[#allocation3 + $0x4] ss:$8 sps:$4 sm:$0xff]   ;;  %v398_v12 = vld [vmem:[#allocation3 + $0x14] ss:$8 sps:$4 sm:$0xff]   ;;  %v393_v18 = vld [vmem:[#allocation3] ss:$8 sps:$4 sm:$0xff]  }
  0x2c   :  { %v388_v13 = vld [vmem:[#allocation6 + $0x28] sm:$0xff]   ;;  %v389_v14 = vld [vmem:[#allocation6 + $0x70] sm:$0xff]   ;;  %240 = vmatprep.mubr.bf16.mxu0 %v395_v11  ;;  %248 = vmatprep.mubr.bf16.mxu1 %v398_v12  ;;  %v391_v16 = vld [vmem:[#allocation6 + $0x78] sm:$0xff]  }
  0x2d   :  { %329 = vmatpush3.bf16.msra.mxu0 %v380_v3  ;;  %363 = vmatpush3.bf16.msra.mxu1 %v380_v3  ;;  %v390_v15 = vld [vmem:[#allocation6 + $0x30] sm:$0xff]   ;;  %v392_v17 = vld [vmem:[#allocation6 + $0x38] sm:$0xff]   ;;  %v325_v23 = vld [vmem:[%s545_s2] ss:$0 sm:$0xff]  ;;  %s443_s2 = scalar_lea.vmem %s293_s14, 512 }
  0x2e   :  { %330 = vmatprep.subr.bf16.mxu0 %v381_v4  ;;  %356 = vmatprep.subr.bf16.mxu1 %v381_v4  ;;  %v396_v19 = vld [vmem:[#allocation3 + $0x10] ss:$8 sps:$4 sm:$0xff]   ;;  %p444_p2 = scmp.ne.s32.totalorder %s293_s14, %s443_s2  ;;  %p449_p4 = scmp.lt.s32.totalorder %s443_s2, %s443_s2 }
  0x30   :  { %p450_p5 = por %p449_p4, %p448_p3 }
  0x31   :  { %331 = vmatpush3.bf16.msra.mxu0 %v382_v5  ;;  %364 = vmatpush3.bf16.msra.mxu1 %v382_v5 }
  0x32   :  { %332 = vmatprep.subr.bf16.mxu0 %v383_v6  ;;  %357 = vmatprep.subr.bf16.mxu1 %v383_v6  ;;  %p451_p6 = pnand %p450_p5, %p444_p2 }
  0x35   :  { %333 = vmatpush3.bf16.msra.mxu0 %v384_v7  ;;  %365 = vmatpush3.bf16.msra.mxu1 %v384_v7 }
  0x36   :  { %334 = vmatprep.subr.bf16.mxu0 %v385_v8  ;;  %358 = vmatprep.subr.bf16.mxu1 %v385_v8 }
  0x39   :  { %335 = vmatpush3.bf16.msra.mxu0 %v386_v9  ;;  %366 = vmatpush3.bf16.msra.mxu1 %v386_v9 }
  0x3a   :  { %336 = vmatprep.subr.bf16.mxu0 %v387_v10  ;;  %359 = vmatprep.subr.bf16.mxu1 %v387_v10 }
  0x3d   :  { %337 = vmatpush3.bf16.msra.mxu0 %v388_v13  ;;  %367 = vmatpush3.bf16.msra.mxu1 %v388_v13 }
  0x3e   :  { %338 = vmatprep.subr.bf16.mxu0 %v389_v14  ;;  %360 = vmatprep.subr.bf16.mxu1 %v389_v14 }
  0x41   :  { %339 = vmatpush3.bf16.msra.mxu0 %v390_v15  ;;  %368 = vmatpush3.bf16.msra.mxu1 %v390_v15 }
  0x42   :  { %340 = vmatprep.subr.bf16.mxu0 %v391_v16  ;;  %361 = vmatprep.subr.bf16.mxu1 %v391_v16 }
  0x45   :  { %341 = vmatpush3.bf16.msra.mxu0 %v392_v17  ;;  %369 = vmatpush3.bf16.msra.mxu1 %v392_v17 }
  0x48   :  { %241 = vmatmul.mubr.bf16.vlgmr.msra.gmra.mrb[0].mxu0 %v393_v18  ;;  %249 = vmatmul.mubr.bf16.vlgmr.msra.gmra.mrb[0].mxu1 %v396_v19 }
 0x11b   :  { %v342_v20 = vpop.f32.mrb[0].mxu0  ;;  %v348_v21 = vpop.f32.mrb[0].mxu1 }
 0x11c   :  { %v343_v22 = vpop.f32.mrb[1].mxu0  ;;  %v349_v24 = vpop.f32.mrb[1].mxu1 }
 0x11d   :  { %v344_v25 = vadd.f32 %v343_v22, %v342_v20  ;;  %v350_v26 = vadd.f32 %v349_v24, %v348_v21  ;;  %v345_v27 = vpop.f32.mrb[2].mxu0  ;;  %v351_v28 = vpop.f32.mrb[2].mxu1 }
 0x11e   :  { %v346_v29 = vpop.f32.mrb[3].mxu0  ;;  %v352_v30 = vpop.f32.mrb[3].mxu1 }
 0x11f   :  { %v279_v31 = vadd.f32 %v344_v25, %v325_v23  ;;  %v281_v32 = vadd.f32 %v350_v26, %v325_v23  ;;  %v347_v33 = vadd.f32 %v346_v29, %v345_v27  ;;  %v353_v34 = vadd.f32 %v352_v30, %v351_v28 }
 0x121   :  { %283 = vst [vmem:[#allocation8] sm:$0xff] %v279_v31  ;;  %285 = vst [vmem:[#allocation8 + $0x10] sm:$0xff] %v281_v32  ;;  %v280_v35 = vadd.f32 %v347_v33, %v325_v23  ;;  %v282_v36 = vadd.f32 %v353_v34, %v325_v23 }
 0x123   :  { %284 = vst [vmem:[#allocation8 + $0x8] sm:$0xff] %v280_v35  ;;  %286 = vst [vmem:[#allocation8 + $0x18] sm:$0xff] %v282_v36 }
 0x124   :  { %454 = shalt.err (!%p451_p6)
}
 0x125   :  { %s455_s17 = scalar_lea.hbm %s546_s3, 512 }
 0x126   :  { %p456_p7 = scmp.ne.s32.totalorder %s546_s3, %s455_s17  ;;  %p459_p8 = scmp.lt.u32.totalorder %s455_s17, %s546_s3 }
 0x128   :  { %p461_p9 = pnand %p459_p8, %p456_p7 }
 0x12a   :  { %464 = shalt.err (!%p461_p9)
}
 0x12b   :  { %298 = dma.vmem_to_hbm [thread:$0]  %s293_s14, 512, %s546_s3, [#allocation5], %s472_s22, %s472_s22, %s473_s23  }
 0x12c   :  { %469 = dma.done.wait [#allocation5], 512  }
 0x12d   :  { %470 = vsyncadd [#allocation5], 4294966784 }
 0x12e   :  { %302 = vsyncpa [#allocation4], 1 }
 0x12f   :  { %303 = vsyncpa [#allocation7], 1 }
 0x130   :  { %304 = vsyncpa [#allocation5], 1 }

</bundles_post_ra>
